<compile_context>
chip_gen: v6e
topology: v6e:2x2x1
jax: 0.10.0
libtpu: 0.0.40
codegen_flags: <defaults>
</compile_context>

<pallas_src>
import functools

import jax
import jax.numpy as jnp
from jax.experimental import pallas as pl
from jax.experimental.pallas import tpu as pltpu

D_BERT = 768        # BERT pooler_output width
HIDDEN = 200        # Linear(768, 200)
N_CLASSES = 2       # Linear(200, 2)
LANE = 128          # TPU lane width (padded class dim)
HID_PAD = 256       # hidden dim padded 200 -> 256 (lane-dense)
DELTA_COL = N_CLASSES  # lane 2 of the padded logits carries (logit1 - logit0)


def _round_up(x, m):
    return (x + m - 1) // m * m


# ----------------------------------------------------------------------------
# Fused kernel per batch tile: Linear -> ReLU -> Linear -> exact 2-class softmax.
# Weights are whole-array VMEM blocks (constant index_map => no re-DMA per step).
# ----------------------------------------------------------------------------
def coref_head_kernel(pooled_ref, w1_ref, b1_ref, w2_ref, b2_ref,
                      logits_ref, probs_ref):
    # Dropout layers (p=0.0 on pooled, p=0.2 / p=0.0 inside the head) are
    # identity in eval mode.
    x = pooled_ref[...].astype(jnp.bfloat16)                       # (TB, 768)

    h = jnp.dot(x, w1_ref[...],
                preferred_element_type=jnp.float32) + b1_ref[...]  # f32 accum
    h = jnp.maximum(h, 0.0)                                        # ReLU, (TB, 256)

    logits = jnp.dot(h.astype(jnp.bfloat16), w2_ref[...],
                     preferred_element_type=jnp.float32) + b2_ref[...]
    logits_ref[...] = logits                                       # (TB, 128) lane-dense

    # Lane DELTA_COL already holds (logit1 - logit0) thanks to the extra W2
    # column, and softmax(logits)[..., 1] == sigmoid(logit1 - logit0).
    # Exact divide (no approx reciprocal); exp rides the EUP slot.
    probs_ref[...] = 1.0 / (1.0 + jnp.exp(-logits))


# ----------------------------------------------------------------------------
# One-time (model-load) weight preparation: lane-dense zero padding + bf16 cast
# + the delta-logit column. NOT part of the per-call forward path.
# ----------------------------------------------------------------------------
def prepare_coref_head_params(w1, b1, w2, b2):
    w1_pad = jnp.zeros((D_BERT, HID_PAD), jnp.bfloat16)
    w1_pad = w1_pad.at[:, :HIDDEN].set(w1.astype(jnp.bfloat16))

    b1_pad = jnp.zeros((1, HID_PAD), jnp.float32)
    b1_pad = b1_pad.at[:, :HIDDEN].set(b1.reshape(1, -1))

    w2_pad = jnp.zeros((HID_PAD, LANE), jnp.bfloat16)
    w2_pad = w2_pad.at[:HIDDEN, :N_CLASSES].set(w2.astype(jnp.bfloat16))
    w2_pad = w2_pad.at[:HIDDEN, DELTA_COL].set((w2[:, 1] - w2[:, 0]).astype(jnp.bfloat16))

    b2_pad = jnp.zeros((1, LANE), jnp.float32)
    b2_pad = b2_pad.at[:, :N_CLASSES].set(b2.reshape(1, -1))
    b2_pad = b2_pad.at[0, DELTA_COL].set(b2[1] - b2[0])

    return w1_pad, b1_pad, w2_pad, b2_pad


# ----------------------------------------------------------------------------
# Forward: batch-tiled pallas_call; weights pinned VMEM-resident across steps.
# ----------------------------------------------------------------------------
@functools.partial(jax.jit, static_argnames=("tile_b",))
def bert_coref_forward(pooled, w1_pad, b1_pad, w2_pad, b2_pad, *, tile_b=256):
    B = pooled.shape[0]
    TB = min(tile_b, _round_up(B, 8))        # sublane-aligned batch tile
    B_pad = _round_up(B, TB)
    if B_pad != B:                           # only pads when actually ragged
        pooled = jnp.zeros((B_pad, D_BERT), pooled.dtype).at[:B].set(pooled)

    grid = (B_pad // TB,)

    cost = pl.CostEstimate(
        flops=2 * B_pad * D_BERT * HID_PAD + 2 * B_pad * HID_PAD * LANE,
        transcendentals=B_pad * LANE,
        bytes_accessed=(w1_pad.size * w1_pad.dtype.itemsize
                        + w2_pad.size * w2_pad.dtype.itemsize
                        + b1_pad.size * 4 + b2_pad.size * 4
                        + B_pad * D_BERT * pooled.dtype.itemsize
                        + 2 * B_pad * LANE * 4),
    )

    logits_pad, probs_pad = pl.pallas_call(
        coref_head_kernel,
        out_shape=(jax.ShapeDtypeStruct((B_pad, LANE), jnp.float32),
                   jax.ShapeDtypeStruct((B_pad, LANE), jnp.float32)),
        grid=grid,
        in_specs=[
            pl.BlockSpec((TB, D_BERT), lambda i: (i, 0)),          # activations: tiled
            pl.BlockSpec((D_BERT, HID_PAD), lambda i: (0, 0)),     # W1: VMEM-resident
            pl.BlockSpec((1, HID_PAD), lambda i: (0, 0)),          # b1
            pl.BlockSpec((HID_PAD, LANE), lambda i: (0, 0)),       # W2
            pl.BlockSpec((1, LANE), lambda i: (0, 0)),             # b2
        ],
        out_specs=(pl.BlockSpec((TB, LANE), lambda i: (i, 0)),
                   pl.BlockSpec((TB, LANE), lambda i: (i, 0))),
        compiler_params=pltpu.CompilerParams(
            dimension_semantics=("parallel",),                     # v7x: both TCs
            vmem_limit_bytes=32 * 1024 * 1024),                    # safe on v5e/v6e/v7x
        cost_estimate=cost,
    )(pooled, w1_pad, b1_pad, w2_pad, b2_pad)

    logits = logits_pad[:B, :N_CLASSES]      # (B, 2)
    probs = probs_pad[:B, DELTA_COL]         # (B,) == softmax(logits)[..., 1]
    return logits, probs


def reference_forward(pooled, w1, b1, w2, b2):
    h = jnp.maximum(pooled @ w1 + b1, 0.0)
    logits = h @ w2 + b2
    probs = jax.nn.softmax(logits, axis=-1)[..., 1]
    return logits, probs


if __name__ == "__main__":
    key = jax.random.PRNGKey(0)
    ks = jax.random.split(key, 5)

    # classification_layer parameters (stored pre-transposed: x @ W + b).
    W1 = 0.02 * jax.random.normal(ks[1], (D_BERT, HIDDEN), jnp.float32)
    b1 = 0.02 * jax.random.normal(ks[2], (HIDDEN,), jnp.float32)
    W2 = 0.02 * jax.random.normal(ks[3], (HIDDEN, N_CLASSES), jnp.float32)
    b2 = 0.02 * jax.random.normal(ks[4], (N_CLASSES,), jnp.float32)

    # Pad + cast ONCE (model-load time), not per forward call.
    params = jax.block_until_ready(prepare_coref_head_params(W1, b1, W2, b2))

    # B=2 mirrors the tiny demo batch; B=20/tile_b=8 exercises the ragged-pad
    # + multi-step grid path.
    for B, tile_b in ((2, 256), (20, 8)):
        # Stand-in for self.bert_layer(...).pooler_output (external pretrained BERT).
        pooled = jax.random.normal(jax.random.fold_in(ks[0], B), (B, D_BERT), jnp.float32)

        logits, probs = bert_coref_forward(pooled, *params, tile_b=tile_b)
        jax.block_until_ready((logits, probs))

        ref_logits, ref_probs = reference_forward(pooled, W1, b1, W2, b2)
        preds = (probs > 0.5).astype(jnp.int32)                    # mirrors .predict()

        assert logits.shape == (B, N_CLASSES) and probs.shape == (B,)
        assert jnp.allclose(logits, ref_logits, atol=1e-2, rtol=1e-2)
        assert jnp.allclose(probs, ref_probs, atol=1e-2, rtol=1e-2)
        assert preds.shape == (B,)

    print("KERNEL_OK")
</pallas_src>

<mosaic_0001>
module attributes {stable_mosaic.version = 11 : i64} {
  func.func @coref_head_kernel(%arg0: i32, %arg1: memref<8x768xf32, #tpu.memory_space<vmem>>, %arg2: memref<768x256xbf16, #tpu.memory_space<vmem>>, %arg3: memref<1x256xf32, #tpu.memory_space<vmem>>, %arg4: memref<256x128xbf16, #tpu.memory_space<vmem>>, %arg5: memref<1x128xf32, #tpu.memory_space<vmem>>, %arg6: memref<8x128xf32, #tpu.memory_space<vmem>>, %arg7: memref<8x128xf32, #tpu.memory_space<vmem>>) attributes {dimension_semantics = [#tpu.dimension_semantics<parallel>], iteration_bounds = array<i64: 1>, scalar_prefetch = 0 : i64, scratch_operands = 0 : i64, tpu.core_type = #tpu.core_type<tc>, window_params = [{transform_indices = @transform_0, window_bounds = array<i64: 8, 768>}, {pipeline_mode = #tpu.pipeline_mode<synchronous>, transform_indices = @transform_1, window_bounds = array<i64: 768, 256>}, {pipeline_mode = #tpu.pipeline_mode<synchronous>, transform_indices = @transform_2, window_bounds = array<i64: 1, 256>}, {pipeline_mode = #tpu.pipeline_mode<synchronous>, transform_indices = @transform_3, window_bounds = array<i64: 256, 128>}, {pipeline_mode = #tpu.pipeline_mode<synchronous>, transform_indices = @transform_4, window_bounds = array<i64: 1, 128>}, {transform_indices = @transform_5, window_bounds = array<i64: 8, 128>}, {transform_indices = @transform_6, window_bounds = array<i64: 8, 128>}]} {
    %c0 = arith.constant 0 : index
    %c0_0 = arith.constant 0 : index
    %0 = vector.load %arg1[%c0, %c0_0] : memref<8x768xf32, #tpu.memory_space<vmem>>, vector<8x768xf32>
    %1 = arith.truncf %0 : vector<8x768xf32> to vector<8x768xbf16>
    %c0_1 = arith.constant 0 : index
    %c0_2 = arith.constant 0 : index
    %2 = vector.load %arg2[%c0_1, %c0_2] : memref<768x256xbf16, #tpu.memory_space<vmem>>, vector<768x256xbf16>
    %cst = arith.constant dense<0.000000e+00> : vector<8x256xf32>
    %3 = tpu.matmul %1, %2, %cst {dimension_numbers = #tpu.dot_dimension_numbers<[1], [0], [0], [1], [0, 0, 1, 1], [], []>} : vector<8x768xbf16>, vector<768x256xbf16>, vector<8x256xf32> -> vector<8x256xf32>
    %c0_3 = arith.constant 0 : index
    %c0_4 = arith.constant 0 : index
    %4 = vector.load %arg3[%c0_3, %c0_4] : memref<1x256xf32, #tpu.memory_space<vmem>>, vector<1x256xf32>
    %5 = vector.broadcast %4 : vector<1x256xf32> to vector<8x256xf32>
    %6 = arith.addf %3, %5 : vector<8x256xf32>
    %cst_5 = arith.constant 0.000000e+00 : f32
    %7 = vector.broadcast %cst_5 : f32 to vector<8x256xf32>
    %8 = arith.maximumf %6, %7 : vector<8x256xf32>
    %9 = arith.truncf %8 : vector<8x256xf32> to vector<8x256xbf16>
    %c0_6 = arith.constant 0 : index
    %c0_7 = arith.constant 0 : index
    %10 = vector.load %arg4[%c0_6, %c0_7] : memref<256x128xbf16, #tpu.memory_space<vmem>>, vector<256x128xbf16>
    %cst_8 = arith.constant dense<0.000000e+00> : vector<8x128xf32>
    %11 = tpu.matmul %9, %10, %cst_8 {dimension_numbers = #tpu.dot_dimension_numbers<[1], [0], [0], [1], [0, 0, 1, 1], [], []>} : vector<8x256xbf16>, vector<256x128xbf16>, vector<8x128xf32> -> vector<8x128xf32>
    %c0_9 = arith.constant 0 : index
    %c0_10 = arith.constant 0 : index
    %12 = vector.load %arg5[%c0_9, %c0_10] : memref<1x128xf32, #tpu.memory_space<vmem>>, vector<1x128xf32>
    %13 = vector.broadcast %12 : vector<1x128xf32> to vector<8x128xf32>
    %14 = arith.addf %11, %13 : vector<8x128xf32>
    %c0_11 = arith.constant 0 : index
    %c0_12 = arith.constant 0 : index
    %15 = vector.load %arg6[%c0_11, %c0_12] : memref<8x128xf32, #tpu.memory_space<vmem>>, vector<8x128xf32>
    tpu.vector_store %arg6[%c0_11, %c0_12], %14 {strides = array<i32>} : memref<8x128xf32, #tpu.memory_space<vmem>>, vector<8x128xf32>,
    %cst_13 = arith.constant 0.000000e+00 : f32
    %16 = vector.broadcast %cst_13 : f32 to vector<8x128xf32>
    %17 = arith.subf %16, %14 : vector<8x128xf32>
    %18 = math.exp %17 : vector<8x128xf32>
    %cst_14 = arith.constant 1.000000e+00 : f32
    %19 = vector.broadcast %cst_14 : f32 to vector<8x128xf32>
    %20 = arith.addf %19, %18 : vector<8x128xf32>
    %cst_15 = arith.constant 1.000000e+00 : f32
    %21 = vector.broadcast %cst_15 : f32 to vector<8x128xf32>
    %22 = arith.divf %21, %20 : vector<8x128xf32>
    %c0_16 = arith.constant 0 : index
    %c0_17 = arith.constant 0 : index
    %23 = vector.load %arg7[%c0_16, %c0_17] : memref<8x128xf32, #tpu.memory_space<vmem>>, vector<8x128xf32>
    tpu.vector_store %arg7[%c0_16, %c0_17], %22 {strides = array<i32>} : memref<8x128xf32, #tpu.memory_space<vmem>>, vector<8x128xf32>,
    return
  }
  func.func @transform_0(%arg0: i32) -> (i32, i32) {
    %c0_i32 = arith.constant 0 : i32
    %c0_i32_0 = arith.constant 0 : i32
    return %arg0, %c0_i32 : i32, i32
  }
  func.func @transform_1(%arg0: i32) -> (i32, i32) {
    %c0_i32 = arith.constant 0 : i32
    %c0_i32_0 = arith.constant 0 : i32
    %c0_i32_1 = arith.constant 0 : i32
    return %c0_i32, %c0_i32_0 : i32, i32
  }
  func.func @transform_2(%arg0: i32) -> (i32, i32) {
    %c0_i32 = arith.constant 0 : i32
    %c0_i32_0 = arith.constant 0 : i32
    %c0_i32_1 = arith.constant 0 : i32
    return %c0_i32, %c0_i32_0 : i32, i32
  }
  func.func @transform_3(%arg0: i32) -> (i32, i32) {
    %c0_i32 = arith.constant 0 : i32
    %c0_i32_0 = arith.constant 0 : i32
    %c0_i32_1 = arith.constant 0 : i32
    return %c0_i32, %c0_i32_0 : i32, i32
  }
  func.func @transform_4(%arg0: i32) -> (i32, i32) {
    %c0_i32 = arith.constant 0 : i32
    %c0_i32_0 = arith.constant 0 : i32
    %c0_i32_1 = arith.constant 0 : i32
    return %c0_i32, %c0_i32_0 : i32, i32
  }
  func.func @transform_5(%arg0: i32) -> (i32, i32) {
    %c0_i32 = arith.constant 0 : i32
    %c0_i32_0 = arith.constant 0 : i32
    return %arg0, %c0_i32 : i32, i32
  }
  func.func @transform_6(%arg0: i32) -> (i32, i32) {
    %c0_i32 = arith.constant 0 : i32
    %c0_i32_0 = arith.constant 0 : i32
    return %arg0, %c0_i32 : i32, i32
  }
}

</mosaic_0001>

<bundles_post_ra>
// kernel: bert_coref_forward.1
= control target key start
LH: loop header
LB: loop body
LE: loop exit
PB: predicated region body
PF: predicated region fallthrough
CT: control target
= control target key end

     0   :  { %12 = vsyncpa [#allocation3], 0  ;;  %s1397_s0 = inlined_call_operand.vmem [shape: f32[8,768], index: 0, kind: input, shape index: {}]   ;;  %s1398_s1 = inlined_call_operand.hbm [shape: bf16[768,256], index: 1, kind: input, shape index: {}]   ;;  %s1399_s2 = inlined_call_operand.vmem [shape: f32[1,256], index: 2, kind: input, shape index: {}]   ;;  %s1400_s3 = inlined_call_operand.hbm [shape: bf16[256,128], index: 3, kind: input, shape index: {}]   ;;  %s1401_s4 = inlined_call_operand.vmem [shape: f32[1,128], index: 4, kind: input, shape index: {}]   ;;  %s1402_s5 = inlined_call_operand.vmem [shape: f32[8,128], index: 5, kind: output, shape index: {0}]   ;;  %s1403_s6 = inlined_call_operand.vmem [shape: f32[8,128], index: 6, kind: output, shape index: {1}]  }
   0x1   :  { %13 = vsyncpa [#allocation5], 0  ;;  %s1320_s21 = smov [#allocation2]  }
   0x2   :  { %s21_s22 = sshll.u32 %s1320_s21, 4  ;;  %s22_s22 = int_to_ptr.vmem [resolvable:$true] %s21_s22 }
   0x3   :  { %s1284_s23 = scalar_lea.vmem %s22_s22, 12288  ;;  %p1289_p1 = scmp.lt.s32.totalorder %s22_s22, %s22_s22 }
   0x4   :  { %p1285_p0 = scmp.ne.s32.totalorder %s22_s22, %s1284_s23  ;;  %p1290_p2 = scmp.lt.s32.totalorder %s1284_s23, %s1284_s23 }
   0x6   :  { %p1291_p3 = por %p1290_p2, %p1289_p1 }
   0x8   :  { %p1292_p4 = pnand %p1291_p3, %p1285_p0 }
   0xa   :  { %1295 = shalt.err (!%p1292_p4)
}
   0xb   :  { %s1321_s24 = smov 128   ;;  %s1322_s25 = smov 8  }
   0xc   :  { %27 = dma.hbm_to_vmem [thread:$0]  %s1398_s1, 12288, %s22_s22, [#allocation3], %s1321_s24, %s1321_s24, %s1322_s25  }
   0xd   :  { %s1323_s28 = smov [#allocation4]  }
   0xe   :  { %s35_s29 = sshll.u32 %s1323_s28, 4  ;;  %s36_s29 = int_to_ptr.vmem [resolvable:$true] %s35_s29 }
   0xf   :  { %s1304_s30 = scalar_lea.vmem %s36_s29, 2048  ;;  %p1309_p6 = scmp.lt.s32.totalorder %s36_s29, %s36_s29 }
  0x10   :  { %p1305_p5 = scmp.ne.s32.totalorder %s36_s29, %s1304_s30  ;;  %p1310_p7 = scmp.lt.s32.totalorder %s1304_s30, %s1304_s30 }
  0x12   :  { %p1311_p8 = por %p1310_p7, %p1309_p6 }
  0x14   :  { %p1312_p9 = pnand %p1311_p8, %p1305_p5 }
  0x16   :  { %1315 = shalt.err (!%p1312_p9)
}
  0x17   :  { %s1324_s7 = smov 64   ;;  %s1325_s8 = smov 4  }
  0x18   :  { %41 = dma.hbm_to_vmem [thread:$0]  %s1400_s3, 2048, %s36_s29, [#allocation5], %s1324_s7, %s1324_s7, %s1325_s8  }
  0x19   :  { %1316 = dma.done.wait [#allocation3], 12288  }
  0x1a   :  { %1317 = vsyncadd [#allocation3], 4294955008 }
  0x1b   :  { %1318 = dma.done.wait [#allocation5], 2048  }
  0x1c   :  { %1319 = vsyncadd [#allocation5], 4294965248  ;;  %v1112_v0 = vld [vmem:[#allocation2 + $0x74] ss:$8 sps:$4 sm:$0xff]   ;;  %v1114_v1 = vld [vmem:[#allocation2 + $0x70] ss:$8 sps:$4 sm:$0xff]  }
  0x1d   :  { %651 = vmatprep.subr.bf16.mxu0 %v1112_v0  ;;  %v1115_v2 = vld [vmem:[#allocation2 + $0x174] ss:$8 sps:$4 sm:$0xff]   ;;  %v1117_v3 = vld [vmem:[#allocation2 + $0x170] ss:$8 sps:$4 sm:$0xff]   ;;  %v1118_v4 = vld [vmem:[#allocation2 + $0x64] ss:$8 sps:$4 sm:$0xff]  }
  0x1e   :  { %652 = vmatpush1.bf16.msra.mxu0 %v1114_v1  ;;  %v1120_v5 = vld [vmem:[#allocation2 + $0x60] ss:$8 sps:$4 sm:$0xff]   ;;  %692 = vmatprep.subr.bf16.mxu1 %v1115_v2  ;;  %v1121_v6 = vld [vmem:[#allocation2 + $0x164] ss:$8 sps:$4 sm:$0xff]   ;;  %v1124_v8 = vld [vmem:[#allocation2 + $0x54] ss:$8 sps:$4 sm:$0xff]  }
  0x1f   :  { %693 = vmatpush1.bf16.msra.mxu1 %v1117_v3  ;;  %653 = vmatprep.subr.bf16.mxu0 %v1118_v4  ;;  %v1123_v7 = vld [vmem:[#allocation2 + $0x160] ss:$8 sps:$4 sm:$0xff]   ;;  %v1126_v9 = vld [vmem:[#allocation2 + $0x50] ss:$8 sps:$4 sm:$0xff]   ;;  %v1127_v10 = vld [vmem:[#allocation2 + $0x154] ss:$8 sps:$4 sm:$0xff]  }
  0x20   :  { %694 = vmatprep.subr.bf16.mxu1 %v1121_v6  ;;  %v1130_v11 = vld [vmem:[#allocation2 + $0x44] ss:$8 sps:$4 sm:$0xff]   ;;  %v1129_v12 = vld [vmem:[#allocation2 + $0x150] ss:$8 sps:$4 sm:$0xff]   ;;  %v1132_v14 = vld [vmem:[#allocation2 + $0x40] ss:$8 sps:$4 sm:$0xff]  }
  0x21   :  { %v1133_v13 = vld [vmem:[#allocation2 + $0x144] ss:$8 sps:$4 sm:$0xff]   ;;  %v1136_v15 = vld [vmem:[#allocation2 + $0x34] ss:$8 sps:$4 sm:$0xff]   ;;  %v1135_v16 = vld [vmem:[#allocation2 + $0x140] ss:$8 sps:$4 sm:$0xff]  }
  0x22   :  { %654 = vmatpush1.bf16.msra.mxu0 %v1120_v5  ;;  %v1139_v17 = vld [vmem:[#allocation2 + $0x134] ss:$8 sps:$4 sm:$0xff]   ;;  %v1138_v18 = vld [vmem:[#allocation2 + $0x30] ss:$8 sps:$4 sm:$0xff]   ;;  %v1142_v19 = vld [vmem:[#allocation2 + $0x24] ss:$8 sps:$4 sm:$0xff]  }
  0x23   :  { %655 = vmatprep.subr.bf16.mxu0 %v1124_v8  ;;  %695 = vmatpush1.bf16.msra.mxu1 %v1123_v7  ;;  %v1141_v20 = vld [vmem:[#allocation2 + $0x130] ss:$8 sps:$4 sm:$0xff]   ;;  %v1145_v21 = vld [vmem:[#allocation2 + $0x124] ss:$8 sps:$4 sm:$0xff]   ;;  %v1144_v22 = vld [vmem:[#allocation2 + $0x20] ss:$8 sps:$4 sm:$0xff]  }
  0x24   :  { %696 = vmatprep.subr.bf16.mxu1 %v1127_v10  ;;  %v1148_v23 = vld [vmem:[#allocation2 + $0x14] ss:$8 sps:$4 sm:$0xff]   ;;  %v1147_v24 = vld [vmem:[#allocation2 + $0x120] ss:$8 sps:$4 sm:$0xff]   ;;  %v1150_v26 = vld [vmem:[#allocation2 + $0x10] ss:$8 sps:$4 sm:$0xff]  }
  0x25   :  { %v1151_v25 = vld [vmem:[#allocation2 + $0x114] ss:$8 sps:$4 sm:$0xff]   ;;  %v1154_v27 = vld [vmem:[#allocation2 + $0x4] ss:$8 sps:$4 sm:$0xff]   ;;  %v1153_v28 = vld [vmem:[#allocation2 + $0x110] ss:$8 sps:$4 sm:$0xff]  }
  0x26   :  { %656 = vmatpush1.bf16.msra.mxu0 %v1126_v9  ;;  %v1157_v29 = vld [vmem:[#allocation2 + $0x104] ss:$8 sps:$4 sm:$0xff]   ;;  %v1156_v30 = vld [vmem:[#allocation2] ss:$8 sps:$4 sm:$0xff]   ;;  %v1160_v31 = vld [vmem:[#allocation2 + $0xf4] ss:$8 sps:$4 sm:$0xff]  }
  0x27   :  { %657 = vmatprep.subr.bf16.mxu0 %v1130_v11  ;;  %697 = vmatpush1.bf16.msra.mxu1 %v1129_v12  ;;  %v1159_v32 = vld [vmem:[#allocation2 + $0x100] ss:$8 sps:$4 sm:$0xff]   ;;  %v1163_v33 = vld [vmem:[#allocation2 + $0x1f4] ss:$8 sps:$4 sm:$0xff]   ;;  %v1162_v34 = vld [vmem:[#allocation2 + $0xf0] ss:$8 sps:$4 sm:$0xff]  }
  0x28   :  { %698 = vmatprep.subr.bf16.mxu1 %v1133_v13  ;;  %v1166_v35 = vld [vmem:[#allocation2 + $0xe4] ss:$8 sps:$4 sm:$0xff]   ;;  %v1165_v36 = vld [vmem:[#allocation2 + $0x1f0] ss:$8 sps:$4 sm:$0xff]   ;;  %v1168_v38 = vld [vmem:[#allocation2 + $0xe0] ss:$8 sps:$4 sm:$0xff]  }
  0x29   :  { %v1169_v37 = vld [vmem:[#allocation2 + $0x1e4] ss:$8 sps:$4 sm:$0xff]   ;;  %v1172_v39 = vld [vmem:[#allocation2 + $0xd4] ss:$8 sps:$4 sm:$0xff]   ;;  %v1171_v40 = vld [vmem:[#allocation2 + $0x1e0] ss:$8 sps:$4 sm:$0xff]  }
  0x2a   :  { %658 = vmatpush1.bf16.msra.mxu0 %v1132_v14  ;;  %v1175_v41 = vld [vmem:[#allocation2 + $0x1d4] ss:$8 sps:$4 sm:$0xff]   ;;  %v1174_v42 = vld [vmem:[#allocation2 + $0xd0] ss:$8 sps:$4 sm:$0xff]   ;;  %v1178_v43 = vld [vmem:[#allocation2 + $0xc4] ss:$8 sps:$4 sm:$0xff]  }
  0x2b   :  { %659 = vmatprep.subr.bf16.mxu0 %v1136_v15  ;;  %699 = vmatpush1.bf16.msra.mxu1 %v1135_v16  ;;  %v1177_v44 = vld [vmem:[#allocation2 + $0x1d0] ss:$8 sps:$4 sm:$0xff]   ;;  %v1181_v45 = vld [vmem:[#allocation2 + $0x1c4] ss:$8 sps:$4 sm:$0xff]   ;;  %v1180_v47 = vld [vmem:[#allocation2 + $0xc0] ss:$8 sps:$4 sm:$0xff]  }
  0x2c   :  { %700 = vmatprep.subr.bf16.mxu1 %v1139_v17  ;;  %v52_v46 = vld [vmem:[%s1397_s0 + $0x8] sm:$0xff]  ;;  %v1184_v49 = vld [vmem:[#allocation2 + $0xb4] ss:$8 sps:$4 sm:$0xff]   ;;  %v1186_v54 = vld [vmem:[#allocation2 + $0xb0] ss:$8 sps:$4 sm:$0xff]  }
  0x2d   :  { %v58_v48 = vpack.c.bf16 %v52_v46, %v52_v46  ;;  %v54_v50 = vld [vmem:[%s1397_s0 + $0x18] sm:$0xff]  ;;  %v1183_v51 = vld [vmem:[#allocation2 + $0x1c0] ss:$8 sps:$4 sm:$0xff]   ;;  %v1190_v55 = vld [vmem:[#allocation2 + $0xa4] ss:$8 sps:$4 sm:$0xff]  }
  0x2e   :  { %660 = vmatpush1.bf16.msra.mxu0 %v1138_v18  ;;  %v60_v52 = vpack.c.bf16 %v54_v50, %v54_v50  ;;  %v1187_v53 = vld [vmem:[#allocation2 + $0x1b4] ss:$8 sps:$4 sm:$0xff]   ;;  %v1189_v56 = vld [vmem:[#allocation2 + $0x1b0] ss:$8 sps:$4 sm:$0xff]   ;;  %v1193_v57 = vld [vmem:[#allocation2 + $0x1a4] ss:$8 sps:$4 sm:$0xff]  }
  0x2f   :  { %661 = vmatprep.subr.bf16.mxu0 %v1142_v19  ;;  %701 = vmatpush1.bf16.msra.mxu1 %v1141_v20  ;;  %v1192_v58 = vld [vmem:[#allocation2 + $0xa0] ss:$8 sps:$4 sm:$0xff]   ;;  %v1196_v59 = vld [vmem:[#allocation2 + $0x94] ss:$8 sps:$4 sm:$0xff]   ;;  %v1198_v62 = vld [vmem:[#allocation2 + $0x90] ss:$8 sps:$4 sm:$0xff]  }
  0x30   :  { %702 = vmatprep.subr.bf16.mxu1 %v1145_v21  ;;  %683 = vmatprep.mubr.bf16.mxu0 %v58_v48  ;;  %v1195_v60 = vld [vmem:[#allocation2 + $0x1a0] ss:$8 sps:$4 sm:$0xff]   ;;  %v1199_v61 = vld [vmem:[#allocation2 + $0x194] ss:$8 sps:$4 sm:$0xff]   ;;  %v1202_v63 = vld [vmem:[#allocation2 + $0x84] ss:$8 sps:$4 sm:$0xff]  }
  0x31   :  { %724 = vmatprep.mubr.bf16.mxu1 %v60_v52  ;;  %v1201_v0 = vld [vmem:[#allocation2 + $0x190] ss:$8 sps:$4 sm:$0xff]   ;;  %v1204_v1 = vld [vmem:[#allocation2 + $0x80] ss:$8 sps:$4 sm:$0xff]   ;;  %v1205_v2 = vld [vmem:[#allocation2 + $0x184] ss:$8 sps:$4 sm:$0xff]  }
  0x32   :  { %662 = vmatpush1.bf16.msra.mxu0 %v1144_v22  ;;  %v1207_v3 = vld [vmem:[#allocation2 + $0x180] ss:$8 sps:$4 sm:$0xff]   ;;  %v1210_v5 = vld [vmem:[#allocation2 + $0x274] ss:$8 sps:$4 sm:$0xff]   ;;  %v1208_v8 = vld [vmem:[#allocation2 + $0x270] ss:$8 sps:$4 sm:$0xff]  }
  0x33   :  { %663 = vmatprep.subr.bf16.mxu0 %v1148_v23  ;;  %703 = vmatpush1.bf16.msra.mxu1 %v1147_v24  ;;  %v51_v4 = vld [vmem:[%s1397_s0] sm:$0xff]  ;;  %v53_v6 = vld [vmem:[%s1397_s0 + $0x10] sm:$0xff]  ;;  %v56_v12 = vld [vmem:[%s1397_s0 + $0x28] sm:$0xff] }
  0x34   :  { %704 = vmatprep.subr.bf16.mxu1 %v1151_v25  ;;  %v57_v7 = vpack.c.bf16 %v51_v4, %v51_v4  ;;  %v59_v9 = vpack.c.bf16 %v53_v6, %v53_v6  ;;  %v1213_v10 = vld [vmem:[#allocation2 + $0x264] ss:$8 sps:$4 sm:$0xff]   ;;  %v1211_v11 = vld [vmem:[#allocation2 + $0x260] ss:$8 sps:$4 sm:$0xff]   ;;  %v1216_v13 = vld [vmem:[#allocation2 + $0x254] ss:$8 sps:$4 sm:$0xff]   ;;  %v62_v14 = vpack.c.bf16 %v56_v12, %v56_v12  ;;  %v161_v4 = vlaneseq }
  0x35   :  { %v1214_v15 = vld [vmem:[#allocation2 + $0x250] ss:$8 sps:$4 sm:$0xff]   ;;  %v1219_v16 = vld [vmem:[#allocation2 + $0x244] ss:$8 sps:$4 sm:$0xff]   ;;  %v1217_v17 = vld [vmem:[#allocation2 + $0x240] ss:$8 sps:$4 sm:$0xff]  }
  0x36   :  { %664 = vmatpush1.bf16.msra.mxu0 %v1150_v26  ;;  %v1222_v18 = vld [vmem:[#allocation2 + $0x234] ss:$8 sps:$4 sm:$0xff]   ;;  %v1220_v19 = vld [vmem:[#allocation2 + $0x230] ss:$8 sps:$4 sm:$0xff]   ;;  %v1225_v20 = vld [vmem:[#allocation2 + $0x224] ss:$8 sps:$4 sm:$0xff]  }
  0x37   :  { %665 = vmatprep.subr.bf16.mxu0 %v1154_v27  ;;  %705 = vmatpush1.bf16.msra.mxu1 %v1153_v28  ;;  %v1223_v21 = vld [vmem:[#allocation2 + $0x220] ss:$8 sps:$4 sm:$0xff]   ;;  %v1228_v22 = vld [vmem:[#allocation2 + $0x214] ss:$8 sps:$4 sm:$0xff]   ;;  %v1226_v23 = vld [vmem:[#allocation2 + $0x210] ss:$8 sps:$4 sm:$0xff]  }
  0x38   :  { %706 = vmatprep.subr.bf16.mxu1 %v1157_v29  ;;  %v1231_v24 = vld [vmem:[#allocation2 + $0x204] ss:$8 sps:$4 sm:$0xff]   ;;  %v1229_v25 = vld [vmem:[#allocation2 + $0x200] ss:$8 sps:$4 sm:$0xff]   ;;  %v1234_v26 = vld [vmem:[#allocation2 + $0x2f4] ss:$8 sps:$4 sm:$0xff]  }
  0x39   :  { %v1232_v27 = vld [vmem:[#allocation2 + $0x2f0] ss:$8 sps:$4 sm:$0xff]   ;;  %v1237_v28 = vld [vmem:[#allocation2 + $0x2e4] ss:$8 sps:$4 sm:$0xff]   ;;  %v1235_v29 = vld [vmem:[#allocation2 + $0x2e0] ss:$8 sps:$4 sm:$0xff]  }
  0x3a   :  { %666 = vmatpush1.bf16.msra.mxu0 %v1156_v30  ;;  %v1240_v30 = vld [vmem:[#allocation2 + $0x2d4] ss:$8 sps:$4 sm:$0xff]   ;;  %v1260_v48 = vld [vmem:[#allocation4 + $0x68] sm:$0xff]   ;;  %v1262_v50 = vld [vmem:[#allocation4 + $0x60] sm:$0xff]  }
  0x3b   :  { %667 = vmatprep.subr.bf16.mxu0 %v1160_v31  ;;  %707 = vmatpush1.bf16.msra.mxu1 %v1159_v32  ;;  %v1238_v31 = vld [vmem:[#allocation2 + $0x2d0] ss:$8 sps:$4 sm:$0xff]   ;;  %v1243_v32 = vld [vmem:[#allocation2 + $0x2c4] ss:$8 sps:$4 sm:$0xff]  }
  0x3c   :  { %708 = vmatprep.subr.bf16.mxu1 %v1163_v33  ;;  %v1241_v33 = vld [vmem:[#allocation2 + $0x2c0] ss:$8 sps:$4 sm:$0xff]   ;;  %v1258_v46 = vld [vmem:[#allocation4 + $0x70] sm:$0xff]   ;;  %v1264_v52 = vld [vmem:[#allocation4 + $0x58] sm:$0xff]  }
  0x3e   :  { %668 = vmatpush2.bf16.msra.mxu0 %v1162_v34  ;;  %v1246_v34 = vld [vmem:[#allocation2 + $0x2b4] ss:$8 sps:$4 sm:$0xff]  }
  0x3f   :  { %669 = vmatprep.subr.bf16.mxu0 %v1166_v35  ;;  %709 = vmatpush2.bf16.msra.mxu1 %v1165_v36  ;;  %v1244_v35 = vld [vmem:[#allocation2 + $0x2b0] ss:$8 sps:$4 sm:$0xff]   ;;  %v1249_v36 = vld [vmem:[#allocation2 + $0x2a4] ss:$8 sps:$4 sm:$0xff]  }
  0x40   :  { %710 = vmatprep.subr.bf16.mxu1 %v1169_v37  ;;  %v1247_v37 = vld [vmem:[#allocation2 + $0x2a0] ss:$8 sps:$4 sm:$0xff]  }
  0x42   :  { %670 = vmatpush2.bf16.msra.mxu0 %v1168_v38  ;;  %v1252_v38 = vld [vmem:[#allocation2 + $0x294] ss:$8 sps:$4 sm:$0xff]  }
  0x43   :  { %671 = vmatprep.subr.bf16.mxu0 %v1172_v39  ;;  %711 = vmatpush2.bf16.msra.mxu1 %v1171_v40  ;;  %v1250_v39 = vld [vmem:[#allocation2 + $0x290] ss:$8 sps:$4 sm:$0xff]   ;;  %v1255_v40 = vld [vmem:[#allocation2 + $0x284] ss:$8 sps:$4 sm:$0xff]  }
  0x44   :  { %712 = vmatprep.subr.bf16.mxu1 %v1175_v41  ;;  %v1253_v41 = vld [vmem:[#allocation2 + $0x280] ss:$8 sps:$4 sm:$0xff]  }
  0x46   :  { %672 = vmatpush2.bf16.msra.mxu0 %v1174_v42  ;;  %v55_v42 = vld [vmem:[%s1397_s0 + $0x20] sm:$0xff] }
  0x47   :  { %673 = vmatprep.subr.bf16.mxu0 %v1178_v43  ;;  %713 = vmatpush2.bf16.msra.mxu1 %v1177_v44  ;;  %v61_v43 = vpack.c.bf16 %v55_v42, %v55_v42  ;;  %v1256_v44 = vld [vmem:[#allocation4 + $0x78] sm:$0xff]  }
  0x48   :  { %714 = vmatprep.subr.bf16.mxu1 %v1181_v45  ;;  %v1257_v45 = vld [vmem:[#allocation4 + $0x38] sm:$0xff]  }
  0x4a   :  { %674 = vmatpush2.bf16.msra.mxu0 %v1180_v47  ;;  %v1259_v47 = vld [vmem:[#allocation4 + $0x30] sm:$0xff]  }
  0x4b   :  { %675 = vmatprep.subr.bf16.mxu0 %v1184_v49  ;;  %715 = vmatpush2.bf16.msra.mxu1 %v1183_v51  ;;  %v1261_v49 = vld [vmem:[#allocation4 + $0x28] sm:$0xff]   ;;  %v1263_v51 = vld [vmem:[#allocation4 + $0x20] sm:$0xff]  }
  0x4c   :  { %716 = vmatprep.subr.bf16.mxu1 %v1187_v53  ;;  %v1265_v53 = vld [vmem:[#allocation4 + $0x18] sm:$0xff]  }
  0x4e   :  { %676 = vmatpush2.bf16.msra.mxu0 %v1186_v54  ;;  %v1266_v54 = vld [vmem:[#allocation4 + $0x50] sm:$0xff]  }
  0x4f   :  { %677 = vmatprep.subr.bf16.mxu0 %v1190_v55  ;;  %717 = vmatpush2.bf16.msra.mxu1 %v1189_v56  ;;  %v1267_v55 = vld [vmem:[#allocation4 + $0x10] sm:$0xff]   ;;  %v1268_v56 = vld [vmem:[#allocation4 + $0x48] sm:$0xff]  }
  0x50   :  { %718 = vmatprep.subr.bf16.mxu1 %v1193_v57  ;;  %v1269_v57 = vld [vmem:[#allocation4 + $0x8] sm:$0xff]  }
  0x52   :  { %678 = vmatpush2.bf16.msra.mxu0 %v1192_v58  ;;  %v1270_v58 = vld [vmem:[#allocation4 + $0x40] sm:$0xff]  }
  0x53   :  { %679 = vmatprep.subr.bf16.mxu0 %v1196_v59  ;;  %719 = vmatpush2.bf16.msra.mxu1 %v1195_v60  ;;  %v1271_v59 = vld [vmem:[#allocation4] sm:$0xff]  }
  0x54   :  { %720 = vmatprep.subr.bf16.mxu1 %v1199_v61 }
  0x56   :  { %680 = vmatpush2.bf16.msra.mxu0 %v1198_v62 }
  0x57   :  { %681 = vmatprep.subr.bf16.mxu0 %v1202_v63  ;;  %721 = vmatpush2.bf16.msra.mxu1 %v1201_v0 }
  0x58   :  { %722 = vmatprep.subr.bf16.mxu1 %v1205_v2 }
  0x5a   :  { %682 = vmatpush2.bf16.msra.mxu0 %v1204_v1 }
  0x5b   :  { %733 = vmatprep.subr.bf16.mxu0 %v1210_v5  ;;  %723 = vmatpush2.bf16.msra.mxu1 %v1207_v3  ;;  %v162_v5 = vshrl.u32 %v161_v4, 7 }
  0x5c   :  { %1084 = vmatprep.subr.bf16.mxu1 %v1256_v44 }
  0x5d   :  { %684 = vmatmul.mubr.bf16.vlgmr.msra.gmra.mxu0 %v57_v7  ;;  %v163_v6 = vsub.s32 0, %v162_v5  ;;  %v159_v7 = vld [vmem:[%s1399_s2] sm:$0x3] }
  0x5e   :  { %734 = vmatpush1.bf16.msra.mxu0 %v1208_v8  ;;  %725 = vmatmul.mubr.bf16.vlgmr.msra.gmra.mxu1 %v59_v9  ;;  %v167_v8 = vsub.s32 1, %v162_v5 }
  0x5f   :  { %735 = vmatprep.subr.bf16.mxu0 %v1213_v10  ;;  %765 = vmatprep.mubr.bf16.mxu0 %v62_v14  ;;  %v164_v9 = vrot.slane %v159_v7, %v163_v6 }
  0x60   :  { %1085 = vmatpush3.bf16.msra.mxu1 %v1257_v45  ;;  %v168_v10 = vrot.slane %v159_v7, %v167_v8 }
  0x61   :  { %1086 = vmatprep.subr.bf16.mxu1 %v1258_v46 }
  0x62   :  { %736 = vmatpush1.bf16.msra.mxu0 %v1211_v11 }
  0x63   :  { %737 = vmatprep.subr.bf16.mxu0 %v1216_v13 }
  0x64   :  { %1087 = vmatpush3.bf16.msra.mxu1 %v1259_v47 }
  0x65   :  { %1088 = vmatprep.subr.bf16.mxu1 %v1260_v48 }
  0x66   :  { %738 = vmatpush1.bf16.msra.mxu0 %v1214_v15 }
  0x67   :  { %739 = vmatprep.subr.bf16.mxu0 %v1219_v16 }
  0x68   :  { %1089 = vmatpush3.bf16.msra.mxu1 %v1261_v49 }
  0x69   :  { %1090 = vmatprep.subr.bf16.mxu1 %v1262_v50 }
  0x6a   :  { %740 = vmatpush1.bf16.msra.mxu0 %v1217_v17 }
  0x6b   :  { %741 = vmatprep.subr.bf16.mxu0 %v1222_v18 }
  0x6c   :  { %1091 = vmatpush3.bf16.msra.mxu1 %v1263_v51 }
  0x6d   :  { %1092 = vmatprep.subr.bf16.mxu1 %v1264_v52 }
  0x6e   :  { %742 = vmatpush1.bf16.msra.mxu0 %v1220_v19 }
  0x6f   :  { %743 = vmatprep.subr.bf16.mxu0 %v1225_v20 }
  0x70   :  { %1093 = vmatpush3.bf16.msra.mxu1 %v1265_v53 }
  0x71   :  { %1094 = vmatprep.subr.bf16.mxu1 %v1266_v54 }
  0x72   :  { %744 = vmatpush1.bf16.msra.mxu0 %v1223_v21 }
  0x73   :  { %745 = vmatprep.subr.bf16.mxu0 %v1228_v22 }
  0x74   :  { %1095 = vmatpush3.bf16.msra.mxu1 %v1267_v55 }
  0x75   :  { %1096 = vmatprep.subr.bf16.mxu1 %v1268_v56 }
  0x76   :  { %746 = vmatpush1.bf16.msra.mxu0 %v1226_v23 }
  0x77   :  { %747 = vmatprep.subr.bf16.mxu0 %v1231_v24 }
  0x78   :  { %1097 = vmatpush3.bf16.msra.mxu1 %v1269_v57 }
  0x79   :  { %1098 = vmatprep.subr.bf16.mxu1 %v1270_v58 }
  0x7a   :  { %748 = vmatpush1.bf16.msra.mxu0 %v1229_v25 }
  0x7b   :  { %749 = vmatprep.subr.bf16.mxu0 %v1234_v26  ;;  %v1067_v26 = vld [vmem:[%s1401_s4] ss:$0 sm:$0xff] }
  0x7c   :  { %1099 = vmatpush3.bf16.msra.mxu1 %v1271_v59 }
  0x7e   :  { %750 = vmatpush2.bf16.msra.mxu0 %v1232_v27 }
  0x7f   :  { %751 = vmatprep.subr.bf16.mxu0 %v1237_v28 }
  0x82   :  { %752 = vmatpush2.bf16.msra.mxu0 %v1235_v29 }
  0x83   :  { %753 = vmatprep.subr.bf16.mxu0 %v1240_v30 }
  0x86   :  { %754 = vmatpush2.bf16.msra.mxu0 %v1238_v31 }
  0x87   :  { %755 = vmatprep.subr.bf16.mxu0 %v1243_v32 }
  0x8a   :  { %756 = vmatpush2.bf16.msra.mxu0 %v1241_v33 }
  0x8b   :  { %757 = vmatprep.subr.bf16.mxu0 %v1246_v34 }
  0x8e   :  { %758 = vmatpush2.bf16.msra.mxu0 %v1244_v35 }
  0x8f   :  { %759 = vmatprep.subr.bf16.mxu0 %v1249_v36 }
  0x92   :  { %760 = vmatpush2.bf16.msra.mxu0 %v1247_v37 }
  0x93   :  { %761 = vmatprep.subr.bf16.mxu0 %v1252_v38 }
  0x96   :  { %762 = vmatpush2.bf16.msra.mxu0 %v1250_v39 }
  0x97   :  { %763 = vmatprep.subr.bf16.mxu0 %v1255_v40 }
  0x9a   :  { %764 = vmatpush2.bf16.msra.mxu0 %v1253_v41 }
  0x9d   :  { %766 = vmatmul.mubr.bf16.vlgmr.msra.gmra.mxu0 %v61_v43 }
 0x11d   :  { %v685_v60 = vpop.f32.mrf.mxu0 }
 0x11e   :  { %v726_v62 = vpop.f32.mrf.mxu1  ;;  %v686_v11 = vadd.f32 %v685_v60, %v164_v9 }
 0x11f   :  { %v687_v61 = vpop.f32.mrf.mxu0 }
 0x120   :  { %v728_v0 = vpop.f32.mrf.mxu1  ;;  %v688_v12 = vadd.f32 %v687_v61, %v168_v10  ;;  %v727_v13 = vadd.f32 %v726_v62, %v686_v11 }
 0x121   :  { %v689_v63 = vpop.f32.mrf.mxu0 }
 0x122   :  { %v730_v2 = vpop.f32.mrf.mxu1  ;;  %v729_v15 = vadd.f32 %v728_v0, %v688_v12 }
 0x123   :  { %v690_v1 = vpop.f32.mrf.mxu0 }
 0x124   :  { %v731_v3 = vpop.f32.mrf.mxu1 }
 0x15d   :  { %v767_v14 = vpop.f32.mrf.mxu0 }
 0x15e   :  { %v768_v16 = vadd.f32 %v767_v14, %v727_v13 }
 0x15f   :  { %v769_v17 = vpop.f32.mrf.mxu0 }
 0x160   :  { %v770_v18 = vadd.f32 %v769_v17, %v729_v15  ;;  %v774_v19 = vmax.f32 %v768_v16, 0.0 }
 0x161   :  { %v771_v20 = vpop.f32.mrf.mxu0 }
 0x162   :  { %v775_v21 = vmax.f32 %v770_v18, 0.0  ;;  %v776_v24 = vpack.c.bf16 %v774_v19, %v774_v19 }
 0x163   :  { %v772_v22 = vpop.f32.mrf.mxu0 }
 0x164   :  { %v777_v23 = vpack.c.bf16 %v775_v21, %v775_v21 }
 0x166   :  { %945 = vmatprep.mubr.bf16.mxu1 %v777_v23 }
 0x167   :  { %946 = vmatmul.mubr.bf16.vlgmr.msra.gmra.mxu1 %v776_v24 }
 0x227   :  { %v1100_v25 = vpop.f32.mrf.mxu1 }
 0x229   :  { %v1101_v27 = vpop.f32.mrf.mxu1 }
 0x22a   :  { %v1102_v28 = vadd.f32 %v1101_v27, %v1100_v25 }
 0x22b   :  { %v1103_v29 = vpop.f32.mrf.mxu1 }
 0x22c   :  { %v948_v30 = vadd.f32 %v1102_v28, %v1067_v26 }
 0x22d   :  { %v1104_v31 = vpop.f32.mrf.mxu1 }
 0x22e   :  { %953 = vst [vmem:[%s1402_s5] sm:$0xff] %v948_v30  ;;  %v954_v32 = vsub.f32 0.0, %v948_v30 }
 0x230   :  { %v955_v33 = vmul.f32 1.442695, %v954_v32 }
 0x232   :  { %1272 = vpow2.f32 %v955_v33 }
 0x23f   :  { %v1273_v34 = vpop.eup %1272 }
 0x240   :  { %v957_v35 = vadd.f32 1.0, %v1273_v34 }
 0x242   :  { %1274 = vrcp.f32 %v957_v35 }
 0x24f   :  { %v1275_v36 = vpop.eup %1274 }
 0x250   :  { %960 = vst [vmem:[%s1403_s6] sm:$0xff] %v1275_v36 }
 0x251   :  { %969 = vsyncpa [#allocation3], 1 }
 0x252   :  { %970 = vsyncpa [#allocation5], 1 }

</bundles_post_ra>
